<compile_context>
chip_gen: v7x
topology: tpu7x:2x2x1
jax: 0.10.0
libtpu: 0.0.40
codegen_flags: <defaults>
</compile_context>

<pallas_src>
import functools

import jax
import jax.numpy as jnp
from jax import lax
from jax.experimental import pallas as pl
from jax.experimental.pallas import tpu as pltpu

_VMEM_LIMIT = 32 * 1024 * 1024  # explicit scoped-VMEM budget; fits v5e/v6e/v7x defaults


# ---------------------------------------------------------------------------
# K1: pre_compute_enc_h = tanh(enc_h @ W_enc + b_enc)   (run once, cached)
# ---------------------------------------------------------------------------
def _precompute_kernel(enc_ref, w_ref, b_ref, pre_ref, *, matmul_dtype):
    enc = enc_ref[...].astype(matmul_dtype)                     # (Rt, E)
    w = w_ref[...].astype(matmul_dtype)                         # (E, A)
    acc = jnp.dot(enc, w, preferred_element_type=jnp.float32)   # MXU, f32 accumulate
    pre = jnp.tanh(acc + b_ref[...])                            # f32 elementwise
    pre_ref[...] = pre.astype(pre_ref.dtype)


def precompute_enc_h(enc_h, w_enc, b_enc, *, matmul_dtype=jnp.float32, row_tile=256):
    """tanh(mlp_enc(enc_h)); computed once per utterance, reused every decoder step."""
    B, T, E = enc_h.shape
    A = w_enc.shape[1]
    R = B * T
    rt = row_tile if (R % row_tile == 0 and row_tile % 8 == 0) else R
    enc2d = enc_h.reshape(R, E)          # layout plumbing in the wrapper (free), not in-kernel
    pre2d = pl.pallas_call(
        functools.partial(_precompute_kernel, matmul_dtype=matmul_dtype),
        out_shape=jax.ShapeDtypeStruct((R, A), matmul_dtype),
        grid_spec=pltpu.PrefetchScalarGridSpec(
            num_scalar_prefetch=0,
            grid=(R // rt,),
            in_specs=[pl.BlockSpec((rt, E), lambda r: (r, 0)),
                      pl.BlockSpec((E, A), lambda r: (0, 0)),
                      pl.BlockSpec((1, A), lambda r: (0, 0))],
            out_specs=pl.BlockSpec((rt, A), lambda r: (r, 0))),
        compiler_params=pltpu.CompilerParams(
            dimension_semantics=("parallel",),
            vmem_limit_bytes=_VMEM_LIMIT),
    )(enc2d, w_enc, b_enc)
    return pre2d.reshape(B, T, A)


# ---------------------------------------------------------------------------
# K2: dec_t = tanh(dec_z @ W_dec + b_dec)   (once per decoder step, tiny)
# ---------------------------------------------------------------------------
def _dec_proj_kernel(dec_ref, w_ref, b_ref, out_ref, *, matmul_dtype):
    dec = dec_ref[...].astype(matmul_dtype)                     # (B, D)
    w = w_ref[...].astype(matmul_dtype)                         # (D, A)
    z = jnp.dot(dec, w, preferred_element_type=jnp.float32)
    out_ref[...] = jnp.tanh(z + b_ref[...])


def dec_proj(dec_z, w_dec, b_dec, *, matmul_dtype=jnp.float32):
    B = dec_z.shape[0]
    A = w_dec.shape[1]
    vmem = pl.BlockSpec(memory_space=pltpu.MemorySpace.VMEM)
    return pl.pallas_call(
        functools.partial(_dec_proj_kernel, matmul_dtype=matmul_dtype),
        out_shape=jax.ShapeDtypeStruct((B, A), jnp.float32),
        in_specs=[vmem, vmem, vmem],
        out_specs=vmem,
    )(dec_z, w_dec, b_dec)


# ---------------------------------------------------------------------------
# K3: masked scores  e[b, t] = <pre[b, t, :], dec_t[b, :]>      (grid: batch x T-tiles)
# ---------------------------------------------------------------------------
def _scores_kernel(lens_ref, pre_ref, decq_ref, e_ref, *, t_tile):
    t = pl.program_id(1)
    pre = pre_ref[...]                                          # (Tt, A)  matmul dtype
    dec_q = decq_ref[...].astype(pre.dtype)                     # (1,  A)
    # (1, A) x (Tt, A)^T -> (1, Tt) on the MXU (replaces VPU mul + lane reduction).
    e = lax.dot_general(dec_q, pre, (((1,), (1,)), ((), ())),
                        preferred_element_type=jnp.float32)     # (1, Tt) f32
    # pad mask (== make_pad_mask + masked_fill_(-inf)), using the global time index.
    pos = t * t_tile + lax.broadcasted_iota(jnp.int32, e.shape, 1)
    e_ref[...] = jnp.where(pos >= lens_ref[...], -jnp.inf, e)


# ---------------------------------------------------------------------------
# K4: w = softmax(scaling * e), c = w @ enc                      (grid: batch x T-tiles)
# ---------------------------------------------------------------------------
def _softmax_context_kernel(e_full_ref, e_ref, enc_ref, w_ref, c_ref,
                            m_ref, inv_ref, *, scaling, matmul_dtype):
    t = pl.program_id(1)

    # Two-pass softmax: the full (1, T) score row is tiny and VMEM-resident, so the row
    # max and 1/denominator are computed once per batch row and reused for every T tile
    # (hoisted out of the T loop, as is the c accumulator init).
    @pl.when(t == 0)
    def _():
        se = scaling * e_full_ref[...]                          # (1, T)
        m = jnp.max(se, axis=1, keepdims=True)                  # (1, 1)
        denom = jnp.sum(jnp.exp(se - m), axis=1, keepdims=True)
        m_ref[...] = m
        inv_ref[...] = pl.reciprocal(denom, approx=True)        # EUP, hides under exp
        c_ref[...] = jnp.zeros_like(c_ref)

    # Padded positions: e = -inf -> exp = 0 exactly.
    w_tile = jnp.exp(scaling * e_ref[...] - m_ref[...]) * inv_ref[...]   # (1, Tt) f32
    w_ref[...] = w_tile

    # Context accumulation as a (1, Tt) @ (Tt, E) MXU matmul (not broadcast-mul + reduce).
    c_ref[...] += jnp.dot(w_tile.astype(matmul_dtype),
                          enc_ref[...].astype(matmul_dtype),
                          preferred_element_type=jnp.float32)


def att_dot_step(enc_h, pre, enc_lens, dec_z, w_dec, b_dec, *,
                 scaling=2.0, matmul_dtype=jnp.float32, t_tile=128):
    """One decoder-step of AttDot, given the cached pre_compute_enc_h.  Returns (c, w)."""
    B, T, E = enc_h.shape
    A = pre.shape[2]
    tt = t_tile if (T % t_tile == 0 and (t_tile % 128 == 0 or t_tile == T)) else T
    n_t = T // tt

    lens = enc_lens.reshape(B, 1, 1).astype(jnp.int32)
    dec_q = dec_proj(dec_z, w_dec, b_dec, matmul_dtype=matmul_dtype).reshape(B, 1, A)

    # ---- K3: masked scores e, shape (B, 1, T), lane-dense last dim -----------
    e = pl.pallas_call(
        functools.partial(_scores_kernel, t_tile=tt),
        out_shape=jax.ShapeDtypeStruct((B, 1, T), jnp.float32),
        grid_spec=pltpu.PrefetchScalarGridSpec(
            num_scalar_prefetch=0,
            grid=(B, n_t),
            in_specs=[pl.BlockSpec((None, 1, 1), lambda b, t: (b, 0, 0)),    # lens
                      pl.BlockSpec((None, tt, A), lambda b, t: (b, t, 0)),   # pre tile
                      pl.BlockSpec((None, 1, A), lambda b, t: (b, 0, 0))],   # dec_t
            out_specs=pl.BlockSpec((None, 1, tt), lambda b, t: (b, 0, t))),
        compiler_params=pltpu.CompilerParams(
            dimension_semantics=("parallel", "parallel"),
            vmem_limit_bytes=_VMEM_LIMIT),
    )(lens, pre, dec_q)

    # ---- K4: softmax + context -----------------------------------------------
    w3, c3 = pl.pallas_call(
        functools.partial(_softmax_context_kernel, scaling=scaling,
                          matmul_dtype=matmul_dtype),
        out_shape=(jax.ShapeDtypeStruct((B, 1, T), jnp.float32),
                   jax.ShapeDtypeStruct((B, 1, E), jnp.float32)),
        grid_spec=pltpu.PrefetchScalarGridSpec(
            num_scalar_prefetch=0,
            grid=(B, n_t),
            in_specs=[pl.BlockSpec((None, 1, T), lambda b, t: (b, 0, 0)),    # e (full row)
                      pl.BlockSpec((None, 1, tt), lambda b, t: (b, 0, t)),   # e tile
                      pl.BlockSpec((None, tt, E), lambda b, t: (b, t, 0))],  # enc tile
            out_specs=(pl.BlockSpec((None, 1, tt), lambda b, t: (b, 0, t)),  # w tile
                       pl.BlockSpec((None, 1, E), lambda b, t: (b, 0, 0))),  # c accumulator
            scratch_shapes=[pltpu.VMEM((1, 1), jnp.float32),                 # row max
                            pltpu.VMEM((1, 1), jnp.float32)]),               # 1/denominator
        compiler_params=pltpu.CompilerParams(
            dimension_semantics=("parallel", "arbitrary"),
            vmem_limit_bytes=_VMEM_LIMIT),
    )(e, e, enc_h)

    return c3.reshape(B, E), w3.reshape(B, T)


class AttDotPallas:
    """Pallas port of AttDot with the same pre_compute_enc_h caching / reset semantics."""

    def __init__(self, eprojs, dunits, att_dim, params, *,
                 matmul_dtype=jnp.float32, t_tile=128, row_tile=256):
        self.eprojs, self.dunits, self.att_dim = eprojs, dunits, att_dim
        self.params = params
        self.matmul_dtype = matmul_dtype
        self.t_tile = t_tile
        self.row_tile = row_tile
        self.reset()

    def reset(self):
        self.enc_h = None
        self.h_length = None
        self.pre_compute_enc_h = None

    def forward(self, enc_hs_pad, enc_hs_len, dec_z, att_prev=None, scaling=2.0):
        B = enc_hs_pad.shape[0]
        if self.pre_compute_enc_h is None:       # K1 runs once, result cached (like torch)
            self.enc_h = enc_hs_pad
            self.h_length = enc_hs_pad.shape[1]
            self.pre_compute_enc_h = precompute_enc_h(
                enc_hs_pad, self.params["w_enc"], self.params["b_enc"],
                matmul_dtype=self.matmul_dtype, row_tile=self.row_tile)
        if dec_z is None:
            dec_z = jnp.zeros((B, self.dunits), jnp.float32)
        else:
            dec_z = dec_z.reshape(B, self.dunits)
        # Mask is rebuilt in-kernel from lengths each step (equivalent to the cached
        # make_pad_mask since enc_h is padded to max(enc_hs_len)).
        return att_dot_step(self.enc_h, self.pre_compute_enc_h, enc_hs_len, dec_z,
                            self.params["w_dec"], self.params["b_dec"],
                            scaling=scaling, matmul_dtype=self.matmul_dtype,
                            t_tile=self.t_tile)


# ---------------------------------------------------------------------------
# Pure-JAX reference (mirrors the kernel's matmul-dtype casts for bf16 checking)
# ---------------------------------------------------------------------------
def _reference(enc_h, enc_lens, dec_z, params, scaling=2.0, matmul_dtype=jnp.float32):
    md = matmul_dtype
    B, T, E = enc_h.shape
    A = params["w_enc"].shape[1]
    pre = jnp.tanh(
        jnp.dot(enc_h.reshape(B * T, E).astype(md), params["w_enc"].astype(md),
                preferred_element_type=jnp.float32).reshape(B, T, A)
        + params["b_enc"]).astype(md)
    dec_t = jnp.tanh(
        jnp.dot(dec_z.astype(md), params["w_dec"].astype(md),
                preferred_element_type=jnp.float32) + params["b_dec"])
    e = jnp.einsum("bta,ba->bt", pre, dec_t.astype(md),
                   preferred_element_type=jnp.float32)
    mask = jnp.arange(T)[None, :] >= enc_lens.reshape(B, 1)
    e = jnp.where(mask, -jnp.inf, e)
    w = jax.nn.softmax(scaling * e, axis=1)
    c = jnp.einsum("bt,bte->be", w.astype(md), enc_h.astype(md),
                   preferred_element_type=jnp.float32)
    return c, w


if __name__ == "__main__":
    B, T = 2, 256       # T chosen so the T-tiled grid (tile=128, lane-aligned) is exercised
    E = 32              # eprojs
    D = 32              # dunits
    A = 32              # att_dim   (production sizes would be padded to multiples of 128)
    scaling = 2.0

    key = jax.random.PRNGKey(0)
    k_enc, k_dec1, k_dec2, k0, k1, k2, k3 = jax.random.split(key, 7)

    enc_h = jax.random.normal(k_enc, (B, T, E), dtype=jnp.float32)
    dec_z1 = jax.random.normal(k_dec1, (B, D), dtype=jnp.float32)
    dec_z2 = jax.random.normal(k_dec2, (B, D), dtype=jnp.float32)
    enc_lens = jnp.array([256, 173], dtype=jnp.int32)

    def uinit(k, shape, fan_in):
        b = 1.0 / (fan_in ** 0.5)
        return jax.random.uniform(k, shape, jnp.float32, -b, b)

    params = {
        "w_enc": uinit(k0, (E, A), E),   # torch Linear weights transposed: (in, out)
        "b_enc": uinit(k1, (1, A), E),
        "w_dec": uinit(k2, (D, A), D),
        "b_dec": uinit(k3, (1, A), D),
    }

    # ---- f32 matmul path (strict check); two decoder steps exercise the cached pre ----
    att = AttDotPallas(E, D, A, params, matmul_dtype=jnp.float32, t_tile=128)
    c1, w1 = att.forward(enc_h, enc_lens, dec_z1, None, scaling)
    c2, w2 = att.forward(enc_h, enc_lens, dec_z2, None, scaling)
    jax.block_until_ready((c1, w1, c2, w2))

    c1_ref, w1_ref = _reference(enc_h, enc_lens, dec_z1, params, scaling)
    c2_ref, w2_ref = _reference(enc_h, enc_lens, dec_z2, params, scaling)
    assert jnp.allclose(w1, w1_ref, rtol=5e-3, atol=5e-3)
    assert jnp.allclose(c1, c1_ref, rtol=5e-3, atol=5e-3)
    assert jnp.allclose(w2, w2_ref, rtol=5e-3, atol=5e-3)
    assert jnp.allclose(c2, c2_ref, rtol=5e-3, atol=5e-3)
    assert float(jnp.sum(jnp.abs(w1[1, 173:]))) == 0.0        # padded weights exactly zero
    assert jnp.allclose(jnp.sum(w1, axis=1), 1.0, atol=5e-3)

    # ---- bf16 matmul operands (v6e/v7x fast path), f32 accumulate ----------------------
    att_bf16 = AttDotPallas(E, D, A, params, matmul_dtype=jnp.bfloat16, t_tile=128)
    c3, w3 = att_bf16.forward(enc_h, enc_lens, dec_z1, None, scaling)
    jax.block_until_ready((c3, w3))
    c3_ref, w3_ref = _reference(enc_h, enc_lens, dec_z1, params, scaling,
                                matmul_dtype=jnp.bfloat16)
    assert jnp.allclose(w3, w3_ref, rtol=3e-2, atol=3e-2)
    assert jnp.allclose(c3, c3_ref, rtol=3e-2, atol=3e-2)
    assert float(jnp.sum(jnp.abs(w3[1, 173:]))) == 0.0

    print("KERNEL_OK")
</pallas_src>

<mosaic_0001>
module attributes {stable_mosaic.version = 11 : i64} {
  func.func @_precompute_kernel(%arg0: i32, %arg1: memref<256x32xf32, #tpu.memory_space<vmem>>, %arg2: memref<32x32xf32, #tpu.memory_space<vmem>>, %arg3: memref<1x32xf32, #tpu.memory_space<vmem>>, %arg4: memref<256x32xf32, #tpu.memory_space<vmem>>) attributes {dimension_semantics = [#tpu.dimension_semantics<parallel>], iteration_bounds = array<i64: 2>, scalar_prefetch = 0 : i64, scratch_operands = 0 : i64, tpu.core_type = #tpu.core_type<tc>, window_params = [{transform_indices = @transform_0, window_bounds = array<i64: 256, 32>}, {pipeline_mode = #tpu.pipeline_mode<synchronous>, transform_indices = @transform_1, window_bounds = array<i64: 32, 32>}, {pipeline_mode = #tpu.pipeline_mode<synchronous>, transform_indices = @transform_2, window_bounds = array<i64: 1, 32>}, {transform_indices = @transform_3, window_bounds = array<i64: 256, 32>}]} {
    %c0 = arith.constant 0 : index
    %c0_0 = arith.constant 0 : index
    %0 = vector.load %arg1[%c0, %c0_0] : memref<256x32xf32, #tpu.memory_space<vmem>>, vector<256x32xf32>
    %c0_1 = arith.constant 0 : index
    %c0_2 = arith.constant 0 : index
    %1 = vector.load %arg2[%c0_1, %c0_2] : memref<32x32xf32, #tpu.memory_space<vmem>>, vector<32x32xf32>
    %cst = arith.constant dense<0.000000e+00> : vector<256x32xf32>
    %2 = tpu.matmul %0, %1, %cst {dimension_numbers = #tpu.dot_dimension_numbers<[1], [0], [0], [1], [0, 0, 1, 1], [], []>} : vector<256x32xf32>, vector<32x32xf32>, vector<256x32xf32> -> vector<256x32xf32>
    %c0_3 = arith.constant 0 : index
    %c0_4 = arith.constant 0 : index
    %3 = vector.load %arg3[%c0_3, %c0_4] : memref<1x32xf32, #tpu.memory_space<vmem>>, vector<1x32xf32>
    %4 = vector.broadcast %3 : vector<1x32xf32> to vector<256x32xf32>
    %5 = arith.addf %2, %4 : vector<256x32xf32>
    %6 = math.tanh %5 : vector<256x32xf32>
    %c0_5 = arith.constant 0 : index
    %c0_6 = arith.constant 0 : index
    %7 = vector.load %arg4[%c0_5, %c0_6] : memref<256x32xf32, #tpu.memory_space<vmem>>, vector<256x32xf32>
    tpu.vector_store %arg4[%c0_5, %c0_6], %6 {strides = array<i32>} : memref<256x32xf32, #tpu.memory_space<vmem>>, vector<256x32xf32>,
    return
  }
  func.func @transform_0(%arg0: i32) -> (i32, i32) {
    %c0_i32 = arith.constant 0 : i32
    %c0_i32_0 = arith.constant 0 : i32
    return %arg0, %c0_i32 : i32, i32
  }
  func.func @transform_1(%arg0: i32) -> (i32, i32) {
    %c0_i32 = arith.constant 0 : i32
    %c0_i32_0 = arith.constant 0 : i32
    %c0_i32_1 = arith.constant 0 : i32
    return %c0_i32, %c0_i32_0 : i32, i32
  }
  func.func @transform_2(%arg0: i32) -> (i32, i32) {
    %c0_i32 = arith.constant 0 : i32
    %c0_i32_0 = arith.constant 0 : i32
    %c0_i32_1 = arith.constant 0 : i32
    return %c0_i32, %c0_i32_0 : i32, i32
  }
  func.func @transform_3(%arg0: i32) -> (i32, i32) {
    %c0_i32 = arith.constant 0 : i32
    %c0_i32_0 = arith.constant 0 : i32
    return %arg0, %c0_i32 : i32, i32
  }
}

</mosaic_0001>

<bundles_post_ra>
// kernel: tpu_custom_call.1
= control target key start
LH: loop header
LB: loop body
LE: loop exit
PB: predicated region body
PF: predicated region fallthrough
CT: control target
= control target key end

     0   :  { %s907_s12 = smov 0   ;;  %s1112_s0 = inlined_call_operand.vmem [shape: f32[512,32], index: 0, kind: input, shape index: {}]   ;;  %s1113_s1 = inlined_call_operand.vmem [shape: f32[32,32], index: 1, kind: input, shape index: {}]   ;;  %s1114_s2 = inlined_call_operand.vmem [shape: f32[1,32], index: 2, kind: input, shape index: {}]   ;;  %s1115_s3 = inlined_call_operand.vmem [shape: f32[512,32], index: 3, kind: output, shape index: {}]  }
   0x1 LB: > { %s659_s13 = sadd.s32 4294967295, %s885_s12   ;;  %p663_p0 = scmp.ge.s32.totalorder %s885_s12, 1  ;;  %s885_s12 = sphi %s907_s12, %s13_s12  }
   0x2   : > { %p138_p1 = scmp.lt.s32.totalorder %s885_s12, 3 }
   0x4   : > { %p139_p2 = pnand %p663_p0, %p138_p1 }
   0x5   : > { %v206_v0 = vld [vmem:[%s1113_s1] sm:$0xff] (!%p139_p2)  ;;  %v207_v1 = vld [vmem:[%s1113_s1 + $0x8] sm:$0xff] (!%p139_p2)  ;;  %v208_v2 = vld [vmem:[%s1113_s1 + $0x10] sm:$0xff] (!%p139_p2)  ;;  %s664_s20 = sshll.u32 (!%p139_p2), %s659_s13, 5  ;;  %vm217_vm0 = vcmask (!%p139_p2), 261120  }
   0x6   : > { %142 = sbr.rel (%p139_p2) target bundleno = 276 (0x114), region = 32  ;;  %v795_v3 = vpack.c.bf16 (!%p139_p2), %v207_v1, %v206_v0  ;;  %v209_v4 = vld [vmem:[%s1113_s1 + $0x18] sm:$0xff] (!%p139_p2)  ;;  %p163_p3 = scmp.lt.s32.totalorder (!%p139_p2), %s664_s20, 63  ;;  %v1004_v38 = vld [vmem:[%s1114_s2] ss:$0 sm:$0xff] (!%p139_p2) }
   0x7   : > { %v799_v5 = vpack.c.bf16 (!%p139_p2), %v209_v4, %v208_v2 }
   0x8   : > { %796 = vmatprep.subr.bf16.mxu0 (!%p139_p2), %v795_v3  ;;  %803 = vmatprep.subr.bf16.mxu1 (!%p139_p2), %v795_v3 }
   0x9   : > { %798 = vmatpush3.bf16.msra.mxu0 (!%p139_p2), %v795_v3  ;;  %805 = vmatpush3.bf16.msra.mxu1 (!%p139_p2), %v795_v3 }
   0xa   : > { %800 = vmatprep.subr.bf16.mxu0 (!%p139_p2), %v799_v5  ;;  %804 = vmatprep.subr.bf16.mxu1 (!%p139_p2), %v799_v5 }
   0xd   : > { %s1117_s20 = smov (!%p163_p3, %s664_s20), 63  ;;  %802 = vmatpush3.bf16.msra.mxu0 %v799_v5  ;;  %806 = vmatpush3.bf16.msra.mxu1 %v799_v5 }
   0xe   : > { %s665_s23 = sshll.u32 %s1117_s20, 3 }
   0xf   : > { %s935_s26 = scalar_lea.vmem %s1112_s0, %s665_s23  ;;  %s1023_s4 = scalar_lea.vmem %s1115_s3, %s665_s23 }
  0x10   : > { %v174_v6 = vld [vmem:[%s935_s26] sm:$0xff]  ;;  %v175_v8 = vld [vmem:[%s935_s26 + $0x8] sm:$0xff]  ;;  %v176_v10 = vld [vmem:[%s935_s26 + $0x10] sm:$0xff] }
  0x11   : > { %v190_v7 = vld [vmem:[%s935_s26 + $0x80] sm:$0xff]  ;;  %v191_v9 = vld [vmem:[%s935_s26 + $0x88] sm:$0xff]  ;;  %747 = vmatprep.mubr.msk.f32.mxu0 %vm217_vm0, %v174_v6  ;;  %v192_v11 = vld [vmem:[%s935_s26 + $0x90] sm:$0xff] }
  0x12   : > { %771 = vmatprep.mubr.msk.f32.mxu1 %vm217_vm0, %v190_v7  ;;  %748 = vmatmul.mubr.msk.f32.vlgmr.msra.gmra.mrb[0].mxu0 %vm217_vm0, %v175_v8  ;;  %v177_v12 = vld [vmem:[%s935_s26 + $0x18] sm:$0xff]  ;;  %v178_v14 = vld [vmem:[%s935_s26 + $0x20] sm:$0xff]  ;;  %v179_v16 = vld [vmem:[%s935_s26 + $0x28] sm:$0xff] }
  0x13   : > { %772 = vmatmul.mubr.msk.f32.vlgmr.msra.gmra.mrb[0].mxu1 %vm217_vm0, %v191_v9  ;;  %750 = vmatprep.mubr.msk.f32.mxu0 %vm217_vm0, %v176_v10  ;;  %v193_v13 = vld [vmem:[%s935_s26 + $0x98] sm:$0xff]  ;;  %v194_v15 = vld [vmem:[%s935_s26 + $0xa0] sm:$0xff]  ;;  %v195_v17 = vld [vmem:[%s935_s26 + $0xa8] sm:$0xff] }
  0x14   : > { %774 = vmatprep.mubr.msk.f32.mxu1 %vm217_vm0, %v192_v11  ;;  %v180_v18 = vld [vmem:[%s935_s26 + $0x30] sm:$0xff]  ;;  %v181_v20 = vld [vmem:[%s935_s26 + $0x38] sm:$0xff]  ;;  %v182_v22 = vld [vmem:[%s935_s26 + $0x40] sm:$0xff] }
  0x15   : > { %v196_v19 = vld [vmem:[%s935_s26 + $0xb0] sm:$0xff]  ;;  %v197_v21 = vld [vmem:[%s935_s26 + $0xb8] sm:$0xff]  ;;  %v198_v23 = vld [vmem:[%s935_s26 + $0xc0] sm:$0xff] }
  0x16   : > { %751 = vmatmul.mubr.msk.f32.gmra.mrb[2].mxu0 %vm217_vm0, %v177_v12  ;;  %v183_v24 = vld [vmem:[%s935_s26 + $0x48] sm:$0xff]  ;;  %v184_v26 = vld [vmem:[%s935_s26 + $0x50] sm:$0xff]  ;;  %v185_v28 = vld [vmem:[%s935_s26 + $0x58] sm:$0xff] }
  0x17   : > { %775 = vmatmul.mubr.msk.f32.gmra.mrb[2].mxu1 %vm217_vm0, %v193_v13  ;;  %753 = vmatprep.mubr.msk.f32.mxu0 %vm217_vm0, %v178_v14  ;;  %v199_v25 = vld [vmem:[%s935_s26 + $0xc8] sm:$0xff]  ;;  %v200_v27 = vld [vmem:[%s935_s26 + $0xd0] sm:$0xff]  ;;  %v201_v29 = vld [vmem:[%s935_s26 + $0xd8] sm:$0xff] }
  0x18   : > { %777 = vmatprep.mubr.msk.f32.mxu1 %vm217_vm0, %v194_v15  ;;  %v186_v30 = vld [vmem:[%s935_s26 + $0x60] sm:$0xff]  ;;  %v187_v32 = vld [vmem:[%s935_s26 + $0x68] sm:$0xff]  ;;  %v188_v34 = vld [vmem:[%s935_s26 + $0x70] sm:$0xff] }
  0x19   : > { %v202_v31 = vld [vmem:[%s935_s26 + $0xe0] sm:$0xff]  ;;  %v203_v33 = vld [vmem:[%s935_s26 + $0xe8] sm:$0xff]  ;;  %v204_v35 = vld [vmem:[%s935_s26 + $0xf0] sm:$0xff] }
  0x1a   : > { %754 = vmatmul.mubr.msk.f32.gmra.mrb[4].mxu0 %vm217_vm0, %v179_v16  ;;  %v189_v36 = vld [vmem:[%s935_s26 + $0x78] sm:$0xff] }
  0x1b   : > { %778 = vmatmul.mubr.msk.f32.gmra.mrb[4].mxu1 %vm217_vm0, %v195_v17  ;;  %756 = vmatprep.mubr.msk.f32.mxu0 %vm217_vm0, %v180_v18  ;;  %v205_v37 = vld [vmem:[%s935_s26 + $0xf8] sm:$0xff] }
  0x1c   : > { %780 = vmatprep.mubr.msk.f32.mxu1 %vm217_vm0, %v196_v19 }
  0x1e   : > { %757 = vmatmul.mubr.msk.f32.gmra.mrb[6].mxu0 %vm217_vm0, %v181_v20 }
  0x1f   : > { %781 = vmatmul.mubr.msk.f32.gmra.mrb[6].mxu1 %vm217_vm0, %v197_v21  ;;  %759 = vmatprep.mubr.msk.f32.mxu0 %vm217_vm0, %v182_v22 }
  0x20   : > { %783 = vmatprep.mubr.msk.f32.mxu1 %vm217_vm0, %v198_v23 }
  0x22   : > { %760 = vmatmul.mubr.msk.f32.gmra.mrb[8].mxu0 %vm217_vm0, %v183_v24 }
  0x23   : > { %784 = vmatmul.mubr.msk.f32.gmra.mrb[8].mxu1 %vm217_vm0, %v199_v25  ;;  %762 = vmatprep.mubr.msk.f32.mxu0 %vm217_vm0, %v184_v26 }
  0x24   : > { %786 = vmatprep.mubr.msk.f32.mxu1 %vm217_vm0, %v200_v27 }
  0x26   : > { %763 = vmatmul.mubr.msk.f32.gmra.mrb[10].mxu0 %vm217_vm0, %v185_v28 }
  0x27   : > { %787 = vmatmul.mubr.msk.f32.gmra.mrb[10].mxu1 %vm217_vm0, %v201_v29  ;;  %765 = vmatprep.mubr.msk.f32.mxu0 %vm217_vm0, %v186_v30 }
  0x28   : > { %789 = vmatprep.mubr.msk.f32.mxu1 %vm217_vm0, %v202_v31 }
  0x2a   : > { %766 = vmatmul.mubr.msk.f32.gmra.mrb[12].mxu0 %vm217_vm0, %v187_v32 }
  0x2b   : > { %790 = vmatmul.mubr.msk.f32.gmra.mrb[12].mxu1 %vm217_vm0, %v203_v33  ;;  %768 = vmatprep.mubr.msk.f32.mxu0 %vm217_vm0, %v188_v34 }
  0x2c   : > { %792 = vmatprep.mubr.msk.f32.mxu1 %vm217_vm0, %v204_v35 }
  0x2e   : > { %769 = vmatmul.mubr.msk.f32.gmra.mrb[14].mxu0 %vm217_vm0, %v189_v36 }
  0x2f   : > { %793 = vmatmul.mubr.msk.f32.gmra.mrb[14].mxu1 %vm217_vm0, %v205_v37 }
  0xe5   : > { %v749_v39 = vpop.f32.mrb[0].mxu0 }
  0xe6   : > { %v773_v40 = vpop.f32.mrb[0].mxu1  ;;  %v386_v41 = vadd.f32 %v749_v39, %v1004_v38  ;;  %v380_v43 = vpop.f32.mrb[1].mxu0 }
  0xe7   : > { %v466_v42 = vadd.f32 %v773_v40, %v1004_v38  ;;  %v460_v44 = vpop.f32.mrb[1].mxu1  ;;  %v381_v45 = vadd.f32 %v1004_v38, %v380_v43 }
  0xe8   : > { %v461_v46 = vadd.f32 %v1004_v38, %v460_v44  ;;  %815 = vtanh.f32 %v386_v41 }
  0xe9   : > { %817 = vtanh.f32 %v466_v42  ;;  %v752_v47 = vpop.f32.mrb[2].mxu0 }
  0xea   : > { %v776_v48 = vpop.f32.mrb[2].mxu1  ;;  %819 = vtanh.f32 %v381_v45  ;;  %v396_v49 = vadd.f32 %v752_v47, %v1004_v38  ;;  %v390_v51 = vpop.f32.mrb[3].mxu0 }
  0xeb   : > { %v476_v50 = vadd.f32 %v776_v48, %v1004_v38  ;;  %v470_v52 = vpop.f32.mrb[3].mxu1  ;;  %821 = vtanh.f32 %v461_v46  ;;  %v391_v53 = vadd.f32 %v1004_v38, %v390_v51 }
  0xec   : > { %v471_v54 = vadd.f32 %v1004_v38, %v470_v52  ;;  %823 = vtanh.f32 %v396_v49 }
  0xed   : > { %825 = vtanh.f32 %v476_v50  ;;  %v755_v55 = vpop.f32.mrb[4].mxu0 }
  0xee   : > { %v779_v56 = vpop.f32.mrb[4].mxu1  ;;  %827 = vtanh.f32 %v391_v53  ;;  %v406_v57 = vadd.f32 %v755_v55, %v1004_v38  ;;  %v400_v59 = vpop.f32.mrb[5].mxu0 }
  0xef   : > { %v486_v58 = vadd.f32 %v779_v56, %v1004_v38  ;;  %v480_v60 = vpop.f32.mrb[5].mxu1  ;;  %829 = vtanh.f32 %v471_v54  ;;  %v401_v61 = vadd.f32 %v1004_v38, %v400_v59 }
  0xf0   : > { %v481_v62 = vadd.f32 %v1004_v38, %v480_v60  ;;  %831 = vtanh.f32 %v406_v57 }
  0xf1   : > { %833 = vtanh.f32 %v486_v58  ;;  %v758_v63 = vpop.f32.mrb[6].mxu0 }
  0xf2   : > { %v782_v0 = vpop.f32.mrb[6].mxu1  ;;  %v816_v1 = vpop.eup %815  ;;  %835 = vtanh.f32 %v401_v61  ;;  %v416_v2 = vadd.f32 %v758_v63, %v1004_v38 }
  0xf3   : > { %v496_v3 = vadd.f32 %v782_v0, %v1004_v38  ;;  %v410_v4 = vpop.f32.mrb[7].mxu0  ;;  %v490_v5 = vpop.f32.mrb[7].mxu1  ;;  %572 = vst.msk [vmem:[%s1023_s4 + $0x8] sm:$0xff] %vm217_vm0, %v816_v1  ;;  %837 = vtanh.f32 %v481_v62 }
  0xf4   : > { %v818_v6 = vpop.eup %817  ;;  %v411_v7 = vadd.f32 %v1004_v38, %v410_v4  ;;  %v491_v8 = vadd.f32 %v1004_v38, %v490_v5  ;;  %839 = vtanh.f32 %v416_v2 }
  0xf5   : > { %v820_v9 = vpop.eup %819  ;;  %588 = vst.msk [vmem:[%s1023_s4 + $0x88] sm:$0xff] %vm217_vm0, %v818_v6  ;;  %841 = vtanh.f32 %v496_v3  ;;  %v761_v11 = vpop.f32.mrb[8].mxu0 }
  0xf6   : > { %v822_v10 = vpop.eup %821  ;;  %571 = vst.msk [vmem:[%s1023_s4] sm:$0xff] %vm217_vm0, %v820_v9  ;;  %v785_v12 = vpop.f32.mrb[8].mxu1  ;;  %843 = vtanh.f32 %v411_v7  ;;  %v426_v14 = vadd.f32 %v761_v11, %v1004_v38 }
  0xf7   : > { %v824_v13 = vpop.eup %823  ;;  %587 = vst.msk [vmem:[%s1023_s4 + $0x80] sm:$0xff] %vm217_vm0, %v822_v10  ;;  %v506_v15 = vadd.f32 %v785_v12, %v1004_v38  ;;  %v420_v16 = vpop.f32.mrb[9].mxu0  ;;  %845 = vtanh.f32 %v491_v8 }
  0xf8   : > { %v500_v17 = vpop.f32.mrb[9].mxu1  ;;  %v826_v18 = vpop.eup %825  ;;  %574 = vst.msk [vmem:[%s1023_s4 + $0x18] sm:$0xff] %vm217_vm0, %v824_v13  ;;  %v421_v19 = vadd.f32 %v1004_v38, %v420_v16  ;;  %847 = vtanh.f32 %v426_v14 }
  0xf9   : > { %v501_v20 = vadd.f32 %v1004_v38, %v500_v17  ;;  %v828_v21 = vpop.eup %827  ;;  %590 = vst.msk [vmem:[%s1023_s4 + $0x98] sm:$0xff] %vm217_vm0, %v826_v18  ;;  %849 = vtanh.f32 %v506_v15  ;;  %v764_v23 = vpop.f32.mrb[10].mxu0 }
  0xfa   : > { %v830_v22 = vpop.eup %829  ;;  %573 = vst.msk [vmem:[%s1023_s4 + $0x10] sm:$0xff] %vm217_vm0, %v828_v21  ;;  %v788_v24 = vpop.f32.mrb[10].mxu1  ;;  %851 = vtanh.f32 %v421_v19  ;;  %v436_v26 = vadd.f32 %v764_v23, %v1004_v38 }
  0xfb   : > { %v832_v25 = vpop.eup %831  ;;  %589 = vst.msk [vmem:[%s1023_s4 + $0x90] sm:$0xff] %vm217_vm0, %v830_v22  ;;  %v516_v27 = vadd.f32 %v788_v24, %v1004_v38  ;;  %v430_v28 = vpop.f32.mrb[11].mxu0  ;;  %853 = vtanh.f32 %v501_v20 }
  0xfc   : > { %v510_v29 = vpop.f32.mrb[11].mxu1  ;;  %v834_v30 = vpop.eup %833  ;;  %576 = vst.msk [vmem:[%s1023_s4 + $0x28] sm:$0xff] %vm217_vm0, %v832_v25  ;;  %v431_v31 = vadd.f32 %v1004_v38, %v430_v28  ;;  %855 = vtanh.f32 %v436_v26 }
  0xfd   : > { %v511_v32 = vadd.f32 %v1004_v38, %v510_v29  ;;  %v836_v33 = vpop.eup %835  ;;  %592 = vst.msk [vmem:[%s1023_s4 + $0xa8] sm:$0xff] %vm217_vm0, %v834_v30  ;;  %857 = vtanh.f32 %v516_v27  ;;  %v767_v35 = vpop.f32.mrb[12].mxu0 }
  0xfe   : > { %v838_v34 = vpop.eup %837  ;;  %575 = vst.msk [vmem:[%s1023_s4 + $0x20] sm:$0xff] %vm217_vm0, %v836_v33  ;;  %v791_v36 = vpop.f32.mrb[12].mxu1  ;;  %859 = vtanh.f32 %v431_v31  ;;  %v446_v39 = vadd.f32 %v767_v35, %v1004_v38 }
  0xff   : > { %v840_v37 = vpop.eup %839  ;;  %591 = vst.msk [vmem:[%s1023_s4 + $0xa0] sm:$0xff] %vm217_vm0, %v838_v34  ;;  %v526_v40 = vadd.f32 %v791_v36, %v1004_v38  ;;  %v440_v41 = vpop.f32.mrb[13].mxu0  ;;  %861 = vtanh.f32 %v511_v32 }
 0x100   : > { %v520_v42 = vpop.f32.mrb[13].mxu1  ;;  %v842_v43 = vpop.eup %841  ;;  %578 = vst.msk [vmem:[%s1023_s4 + $0x38] sm:$0xff] %vm217_vm0, %v840_v37  ;;  %v441_v44 = vadd.f32 %v1004_v38, %v440_v41  ;;  %863 = vtanh.f32 %v446_v39 }
 0x101   : > { %v521_v45 = vadd.f32 %v1004_v38, %v520_v42  ;;  %v844_v46 = vpop.eup %843  ;;  %594 = vst.msk [vmem:[%s1023_s4 + $0xb8] sm:$0xff] %vm217_vm0, %v842_v43  ;;  %865 = vtanh.f32 %v526_v40  ;;  %v770_v48 = vpop.f32.mrb[14].mxu0 }
 0x102   : > { %v846_v47 = vpop.eup %845  ;;  %577 = vst.msk [vmem:[%s1023_s4 + $0x30] sm:$0xff] %vm217_vm0, %v844_v46  ;;  %v794_v49 = vpop.f32.mrb[14].mxu1  ;;  %867 = vtanh.f32 %v441_v44  ;;  %v456_v51 = vadd.f32 %v770_v48, %v1004_v38 }
 0x103   : > { %v848_v50 = vpop.eup %847  ;;  %593 = vst.msk [vmem:[%s1023_s4 + $0xb0] sm:$0xff] %vm217_vm0, %v846_v47  ;;  %v536_v52 = vadd.f32 %v794_v49, %v1004_v38  ;;  %v450_v53 = vpop.f32.mrb[15].mxu0  ;;  %869 = vtanh.f32 %v521_v45 }
 0x104   : > { %v530_v54 = vpop.f32.mrb[15].mxu1  ;;  %v850_v55 = vpop.eup %849  ;;  %580 = vst.msk [vmem:[%s1023_s4 + $0x48] sm:$0xff] %vm217_vm0, %v848_v50  ;;  %v451_v56 = vadd.f32 %v1004_v38, %v450_v53  ;;  %871 = vtanh.f32 %v456_v51 }
 0x105   : > { %v531_v57 = vadd.f32 %v1004_v38, %v530_v54  ;;  %v852_v58 = vpop.eup %851  ;;  %596 = vst.msk [vmem:[%s1023_s4 + $0xc8] sm:$0xff] %vm217_vm0, %v850_v55  ;;  %873 = vtanh.f32 %v536_v52 }
 0x106   : > { %v854_v59 = vpop.eup %853  ;;  %579 = vst.msk [vmem:[%s1023_s4 + $0x40] sm:$0xff] %vm217_vm0, %v852_v58  ;;  %875 = vtanh.f32 %v451_v56 }
 0x107   : > { %v856_v60 = vpop.eup %855  ;;  %595 = vst.msk [vmem:[%s1023_s4 + $0xc0] sm:$0xff] %vm217_vm0, %v854_v59  ;;  %877 = vtanh.f32 %v531_v57 }
 0x108   : > { %v858_v61 = vpop.eup %857  ;;  %582 = vst.msk [vmem:[%s1023_s4 + $0x58] sm:$0xff] %vm217_vm0, %v856_v60 }
 0x109   : > { %v860_v38 = vpop.eup %859  ;;  %598 = vst.msk [vmem:[%s1023_s4 + $0xd8] sm:$0xff] %vm217_vm0, %v858_v61 }
 0x10a   : > { %v862_v62 = vpop.eup %861  ;;  %581 = vst.msk [vmem:[%s1023_s4 + $0x50] sm:$0xff] %vm217_vm0, %v860_v38 }
 0x10b   : > { %v864_v63 = vpop.eup %863  ;;  %597 = vst.msk [vmem:[%s1023_s4 + $0xd0] sm:$0xff] %vm217_vm0, %v862_v62 }
 0x10c   : > { %v866_v0 = vpop.eup %865  ;;  %584 = vst.msk [vmem:[%s1023_s4 + $0x68] sm:$0xff] %vm217_vm0, %v864_v63 }
 0x10d   : > { %v868_v1 = vpop.eup %867  ;;  %600 = vst.msk [vmem:[%s1023_s4 + $0xe8] sm:$0xff] %vm217_vm0, %v866_v0 }
 0x10e   : > { %v870_v2 = vpop.eup %869  ;;  %583 = vst.msk [vmem:[%s1023_s4 + $0x60] sm:$0xff] %vm217_vm0, %v868_v1 }
 0x10f   : > { %v872_v3 = vpop.eup %871  ;;  %599 = vst.msk [vmem:[%s1023_s4 + $0xe0] sm:$0xff] %vm217_vm0, %v870_v2 }
 0x110   : > { %v874_v4 = vpop.eup %873  ;;  %586 = vst.msk [vmem:[%s1023_s4 + $0x78] sm:$0xff] %vm217_vm0, %v872_v3 }
 0x111   : > { %v876_v5 = vpop.eup %875  ;;  %602 = vst.msk [vmem:[%s1023_s4 + $0xf8] sm:$0xff] %vm217_vm0, %v874_v4 }
 0x112   : > { %v878_v6 = vpop.eup %877  ;;  %585 = vst.msk [vmem:[%s1023_s4 + $0x70] sm:$0xff] %vm217_vm0, %v876_v5 }
 0x113   : > { %601 = vst.msk [vmem:[%s1023_s4 + $0xf0] sm:$0xff] %vm217_vm0, %v878_v6 }
 0x114 PF: > { %s13_s12 = sadd.s32 1, %s885_s12  }
 0x115   : > { %p10_p4 = scmp.ge.s32.totalorder %s13_s12, 4  }
 0x117   :  { %12 = sbr.rel (!%p10_p4) target bundleno = 1 (0x1), region = 62 }

</bundles_post_ra>
